<compile_context>
chip_gen: v6e
topology: v6e:2x2x1
jax: 0.10.0
libtpu: 0.0.40
codegen_flags: <defaults>
</compile_context>

<pallas_src>
import math
from functools import partial

import jax
import jax.numpy as jnp
from jax import lax
from jax.experimental import pallas as pl
from jax.experimental.pallas import tpu as pltpu


# ---------------------------------------------------------------------------
# Fused kernel: per (batch, q-tile) attention over all heads + fc_out epilogue
# ---------------------------------------------------------------------------
def _fused_attn_fc_kernel(q_ref, k_ref, v_ref, w_ref, b_ref, o_ref, *,
                          scale, heads, head_dim):
    # q_ref: (TQ, E)   k_ref/v_ref: (Lk, E)
    # w_ref: (H, D, E) b_ref: (1, E)           o_ref: (TQ, E)
    tq = q_ref.shape[0]
    emb = q_ref.shape[1]

    acc = jnp.zeros((tq, emb), jnp.float32)            # fused fc_out accumulator

    # Static (unrolled) loop over heads: all slices are compile-time lane
    # slices of the contiguous E axis — no relayouts, no gathers.
    for h in range(heads):
        lo = h * head_dim
        hi = lo + head_dim

        qh = q_ref[:, lo:hi] * scale                   # (TQ, D), native dtype
        kh = k_ref[:, lo:hi]                           # (Lk, D)
        vh = v_ref[:, lo:hi]                           # (Lk, D)

        # Scores on the MXU, f32 accumulate, contraction over D (last dim of
        # both operands — no explicit transpose materialized by us).
        s = lax.dot_general(qh, kh, (((1,), (1,)), ((), ())),
                            preferred_element_type=jnp.float32)   # (TQ, Lk)

        # Numerically-stable softmax over keys (dim=3 in the torch code).
        m = jnp.max(s, axis=-1, keepdims=True)
        e = jnp.exp(s - m)
        p = e * pl.reciprocal(jnp.sum(e, axis=-1, keepdims=True), approx=True)

        # Weighted sum of values (MXU), f32 accumulate.
        ah = jnp.dot(p.astype(vh.dtype), vh,
                     preferred_element_type=jnp.float32)          # (TQ, D)

        # Fused fc_out contribution of this head:  acc += ah @ W_h
        acc = acc + jnp.dot(ah.astype(w_ref.dtype), w_ref[h],
                            preferred_element_type=jnp.float32)   # (TQ, E)

    o_ref[...] = (acc + b_ref[...].astype(jnp.float32)).astype(o_ref.dtype)


def _choose_tq(lq):
    # Largest q-tile that divides Lq and keeps the blocks legal
    # (TQ multiple of 8, or TQ == Lq).
    for cand in (512, 256, 128, 64, 32, 16, 8):
        if lq % cand == 0:
            return cand
    return lq


# ---------------------------------------------------------------------------
# Module-equivalent wrapper
# ---------------------------------------------------------------------------
def self_attention_forward(values, keys, queries, mask, params, embedding_size, heads):
    # values/keys/queries: (N, L, embedding_size)
    # TODO(synk): PyTorch mask branch calls nonexistent `masked_fil`; not reproducible.
    assert mask is None
    head_dim = embedding_size // heads
    assert head_dim * heads == embedding_size

    N, Lq, _ = queries.shape
    Lk = keys.shape[1]
    Lv = values.shape[1]
    assert Lk == Lv  # required by the torch einsum 'nhql,nlhd->nqhd'

    dtype = queries.dtype
    scale = 1.0 / math.sqrt(float(embedding_size))  # faithful: 1/sqrt(E), NOT 1/sqrt(D)

    # One-time weight plumbing: nn.Linear computes x @ W.T + b, W: (E_out, E_in).
    # Split W.T per head -> (H, D, E_out) so fc_out fuses into the epilogue.
    w_t = params["fc_w"].T.reshape(heads, head_dim, embedding_size)
    b2 = params["fc_b"].reshape(1, embedding_size)

    tq = _choose_tq(Lq)
    grid = (N, Lq // tq)

    kernel = partial(_fused_attn_fc_kernel, scale=scale,
                     heads=heads, head_dim=head_dim)

    out = pl.pallas_call(
        kernel,
        out_shape=jax.ShapeDtypeStruct((N, Lq, embedding_size), dtype),
        grid=grid,
        in_specs=[
            pl.BlockSpec((None, tq, embedding_size), lambda n, i: (n, i, 0)),
            pl.BlockSpec((None, Lk, embedding_size), lambda n, i: (n, 0, 0)),
            pl.BlockSpec((None, Lv, embedding_size), lambda n, i: (n, 0, 0)),
            pl.BlockSpec((heads, head_dim, embedding_size), lambda n, i: (0, 0, 0)),
            pl.BlockSpec((1, embedding_size), lambda n, i: (0, 0)),
        ],
        out_specs=pl.BlockSpec((None, tq, embedding_size), lambda n, i: (n, i, 0)),
        compiler_params=pltpu.CompilerParams(
            dimension_semantics=("parallel", "parallel")),
    )(queries, keys, values, w_t, b2)
    return out


# ---------------------------------------------------------------------------
# Pure-JAX reference (mirrors the PyTorch forward)
# ---------------------------------------------------------------------------
def reference_forward(values, keys, queries, params, embedding_size, heads):
    head_dim = embedding_size // heads
    N, Lq, _ = queries.shape
    Lk = keys.shape[1]
    Lv = values.shape[1]
    q = queries.reshape(N, Lq, heads, head_dim)
    k = keys.reshape(N, Lk, heads, head_dim)
    v = values.reshape(N, Lv, heads, head_dim)
    qk = jnp.einsum("nqhd,nkhd->nhqk", q, k)
    att = jax.nn.softmax(qk / math.sqrt(float(embedding_size)), axis=3)
    out = jnp.einsum("nhql,nlhd->nqhd", att, v).reshape(N, Lq, heads * head_dim)
    return out @ params["fc_w"].T + params["fc_b"]


if __name__ == "__main__":
    N, L, heads, embedding_size = 2, 8, 4, 32

    key = jax.random.PRNGKey(0)
    kv, kk, kq, kw, kb = jax.random.split(key, 5)

    values = jax.random.normal(kv, (N, L, embedding_size), dtype=jnp.float32)
    keys = jax.random.normal(kk, (N, L, embedding_size), dtype=jnp.float32)
    queries = jax.random.normal(kq, (N, L, embedding_size), dtype=jnp.float32)

    # Deterministic fc_out parameters (nn.Linear(E, E): weight (E, E), bias (E,)).
    bound = 1.0 / math.sqrt(embedding_size)
    params = {
        "fc_w": jax.random.uniform(kw, (embedding_size, embedding_size),
                                   minval=-bound, maxval=bound, dtype=jnp.float32),
        "fc_b": jax.random.uniform(kb, (embedding_size,),
                                   minval=-bound, maxval=bound, dtype=jnp.float32),
    }

    out = self_attention_forward(values, keys, queries, None, params,
                                 embedding_size, heads)
    out = jax.block_until_ready(out)

    ref = reference_forward(values, keys, queries, params, embedding_size, heads)
    assert out.shape == (N, L, embedding_size)
    assert out.dtype == queries.dtype
    # Tolerance relaxed slightly for the EUP approximate reciprocal in softmax.
    assert jnp.allclose(out, ref, atol=2e-2, rtol=2e-2)

    print("KERNEL_OK")
</pallas_src>

<mosaic_0001>
module attributes {stable_mosaic.version = 11 : i64} {
  func.func @_fused_attn_fc_kernel(%arg0: i32, %arg1: i32, %arg2: memref<1x8x32xf32, #tpu.memory_space<vmem>>, %arg3: memref<1x8x32xf32, #tpu.memory_space<vmem>>, %arg4: memref<1x8x32xf32, #tpu.memory_space<vmem>>, %arg5: memref<4x8x32xf32, #tpu.memory_space<vmem>>, %arg6: memref<1x32xf32, #tpu.memory_space<vmem>>, %arg7: memref<1x8x32xf32, #tpu.memory_space<vmem>>) attributes {dimension_semantics = [#tpu.dimension_semantics<parallel>, #tpu.dimension_semantics<parallel>], iteration_bounds = array<i64: 2, 1>, scalar_prefetch = 0 : i64, scratch_operands = 0 : i64, tpu.core_type = #tpu.core_type<tc>, window_params = [{transform_indices = @transform_0, window_bounds = array<i64: 1, 8, 32>}, {transform_indices = @transform_1, window_bounds = array<i64: 1, 8, 32>}, {transform_indices = @transform_2, window_bounds = array<i64: 1, 8, 32>}, {pipeline_mode = #tpu.pipeline_mode<synchronous>, transform_indices = @transform_3, window_bounds = array<i64: 4, 8, 32>}, {pipeline_mode = #tpu.pipeline_mode<synchronous>, transform_indices = @transform_4, window_bounds = array<i64: 1, 32>}, {transform_indices = @transform_5, window_bounds = array<i64: 1, 8, 32>}]} {
    %cst = arith.constant 0.000000e+00 : f32
    %0 = vector.broadcast %cst : f32 to vector<8x32xf32>
    %c0 = arith.constant 0 : index
    %c0_0 = arith.constant 0 : index
    %c0_1 = arith.constant 0 : index
    %1 = vector.load %arg2[%c0, %c0_0, %c0_1] : memref<1x8x32xf32, #tpu.memory_space<vmem>>, vector<1x8x8xf32>
    %2 = vector.shape_cast %1 : vector<1x8x8xf32> to vector<8x8xf32>
    %cst_2 = arith.constant 0.176776692 : f32
    %3 = vector.broadcast %cst_2 : f32 to vector<8x8xf32>
    %4 = arith.mulf %2, %3 : vector<8x8xf32>
    %c0_3 = arith.constant 0 : index
    %c0_4 = arith.constant 0 : index
    %c0_5 = arith.constant 0 : index
    %5 = vector.load %arg3[%c0_3, %c0_4, %c0_5] : memref<1x8x32xf32, #tpu.memory_space<vmem>>, vector<1x8x8xf32>
    %6 = vector.shape_cast %5 : vector<1x8x8xf32> to vector<8x8xf32>
    %c0_6 = arith.constant 0 : index
    %c0_7 = arith.constant 0 : index
    %c0_8 = arith.constant 0 : index
    %7 = vector.load %arg4[%c0_6, %c0_7, %c0_8] : memref<1x8x32xf32, #tpu.memory_space<vmem>>, vector<1x8x8xf32>
    %8 = vector.shape_cast %7 : vector<1x8x8xf32> to vector<8x8xf32>
    %cst_9 = arith.constant dense<0.000000e+00> : vector<8x8xf32>
    %9 = tpu.matmul %4, %6, %cst_9 {dimension_numbers = #tpu.dot_dimension_numbers<[1], [1], [0], [0], [0, 0, 1, 0], [], []>} : vector<8x8xf32>, vector<8x8xf32>, vector<8x8xf32> -> vector<8x8xf32>
    %cst_10 = arith.constant dense<0xFF800000> : vector<8xf32>
    %10 = vector.multi_reduction <maximumf>, %9, %cst_10 [1] : vector<8x8xf32> to vector<8xf32>
    %11 = vector.shape_cast %10 : vector<8xf32> to vector<8x1xf32>
    %12 = vector.broadcast %11 : vector<8x1xf32> to vector<8x8xf32>
    %13 = arith.subf %9, %12 : vector<8x8xf32>
    %14 = math.exp %13 : vector<8x8xf32>
    %cst_11 = arith.constant dense<0.000000e+00> : vector<8xf32>
    %15 = vector.multi_reduction <add>, %14, %cst_11 [1] : vector<8x8xf32> to vector<8xf32>
    %16 = vector.shape_cast %15 : vector<8xf32> to vector<8x1xf32>
    %17 = tpu.reciprocal %16 {approx = true} : vector<8x1xf32> -> vector<8x1xf32>
    %18 = vector.broadcast %17 : vector<8x1xf32> to vector<8x8xf32>
    %19 = arith.mulf %14, %18 : vector<8x8xf32>
    %cst_12 = arith.constant dense<0.000000e+00> : vector<8x8xf32>
    %20 = tpu.matmul %19, %8, %cst_12 {dimension_numbers = #tpu.dot_dimension_numbers<[1], [0], [0], [1], [0, 0, 1, 1], [], []>} : vector<8x8xf32>, vector<8x8xf32>, vector<8x8xf32> -> vector<8x8xf32>
    %c0_13 = arith.constant 0 : index
    %c0_14 = arith.constant 0 : index
    %c0_15 = arith.constant 0 : index
    %21 = vector.load %arg5[%c0_13, %c0_14, %c0_15] : memref<4x8x32xf32, #tpu.memory_space<vmem>>, vector<1x8x32xf32>
    %22 = vector.shape_cast %21 : vector<1x8x32xf32> to vector<8x32xf32>
    %cst_16 = arith.constant dense<0.000000e+00> : vector<8x32xf32>
    %23 = tpu.matmul %20, %22, %cst_16 {dimension_numbers = #tpu.dot_dimension_numbers<[1], [0], [0], [1], [0, 0, 1, 1], [], []>} : vector<8x8xf32>, vector<8x32xf32>, vector<8x32xf32> -> vector<8x32xf32>
    %24 = arith.addf %0, %23 : vector<8x32xf32>
    %c0_17 = arith.constant 0 : index
    %c0_18 = arith.constant 0 : index
    %c8 = arith.constant 8 : index
    %25 = vector.load %arg2[%c0_17, %c0_18, %c8] : memref<1x8x32xf32, #tpu.memory_space<vmem>>, vector<1x8x8xf32>
    %26 = vector.shape_cast %25 : vector<1x8x8xf32> to vector<8x8xf32>
    %cst_19 = arith.constant 0.176776692 : f32
    %27 = vector.broadcast %cst_19 : f32 to vector<8x8xf32>
    %28 = arith.mulf %26, %27 : vector<8x8xf32>
    %c0_20 = arith.constant 0 : index
    %c0_21 = arith.constant 0 : index
    %c8_22 = arith.constant 8 : index
    %29 = vector.load %arg3[%c0_20, %c0_21, %c8_22] : memref<1x8x32xf32, #tpu.memory_space<vmem>>, vector<1x8x8xf32>
    %30 = vector.shape_cast %29 : vector<1x8x8xf32> to vector<8x8xf32>
    %c0_23 = arith.constant 0 : index
    %c0_24 = arith.constant 0 : index
    %c8_25 = arith.constant 8 : index
    %31 = vector.load %arg4[%c0_23, %c0_24, %c8_25] : memref<1x8x32xf32, #tpu.memory_space<vmem>>, vector<1x8x8xf32>
    %32 = vector.shape_cast %31 : vector<1x8x8xf32> to vector<8x8xf32>
    %cst_26 = arith.constant dense<0.000000e+00> : vector<8x8xf32>
    %33 = tpu.matmul %28, %30, %cst_26 {dimension_numbers = #tpu.dot_dimension_numbers<[1], [1], [0], [0], [0, 0, 1, 0], [], []>} : vector<8x8xf32>, vector<8x8xf32>, vector<8x8xf32> -> vector<8x8xf32>
    %cst_27 = arith.constant dense<0xFF800000> : vector<8xf32>
    %34 = vector.multi_reduction <maximumf>, %33, %cst_27 [1] : vector<8x8xf32> to vector<8xf32>
    %35 = vector.shape_cast %34 : vector<8xf32> to vector<8x1xf32>
    %36 = vector.broadcast %35 : vector<8x1xf32> to vector<8x8xf32>
    %37 = arith.subf %33, %36 : vector<8x8xf32>
    %38 = math.exp %37 : vector<8x8xf32>
    %cst_28 = arith.constant dense<0.000000e+00> : vector<8xf32>
    %39 = vector.multi_reduction <add>, %38, %cst_28 [1] : vector<8x8xf32> to vector<8xf32>
    %40 = vector.shape_cast %39 : vector<8xf32> to vector<8x1xf32>
    %41 = tpu.reciprocal %40 {approx = true} : vector<8x1xf32> -> vector<8x1xf32>
    %42 = vector.broadcast %41 : vector<8x1xf32> to vector<8x8xf32>
    %43 = arith.mulf %38, %42 : vector<8x8xf32>
    %cst_29 = arith.constant dense<0.000000e+00> : vector<8x8xf32>
    %44 = tpu.matmul %43, %32, %cst_29 {dimension_numbers = #tpu.dot_dimension_numbers<[1], [0], [0], [1], [0, 0, 1, 1], [], []>} : vector<8x8xf32>, vector<8x8xf32>, vector<8x8xf32> -> vector<8x8xf32>
    %c1 = arith.constant 1 : index
    %c0_30 = arith.constant 0 : index
    %c0_31 = arith.constant 0 : index
    %45 = vector.load %arg5[%c1, %c0_30, %c0_31] : memref<4x8x32xf32, #tpu.memory_space<vmem>>, vector<1x8x32xf32>
    %46 = vector.shape_cast %45 : vector<1x8x32xf32> to vector<8x32xf32>
    %cst_32 = arith.constant dense<0.000000e+00> : vector<8x32xf32>
    %47 = tpu.matmul %44, %46, %cst_32 {dimension_numbers = #tpu.dot_dimension_numbers<[1], [0], [0], [1], [0, 0, 1, 1], [], []>} : vector<8x8xf32>, vector<8x32xf32>, vector<8x32xf32> -> vector<8x32xf32>
    %48 = arith.addf %24, %47 : vector<8x32xf32>
    %c0_33 = arith.constant 0 : index
    %c0_34 = arith.constant 0 : index
    %c16 = arith.constant 16 : index
    %49 = vector.load %arg2[%c0_33, %c0_34, %c16] : memref<1x8x32xf32, #tpu.memory_space<vmem>>, vector<1x8x8xf32>
    %50 = vector.shape_cast %49 : vector<1x8x8xf32> to vector<8x8xf32>
    %cst_35 = arith.constant 0.176776692 : f32
    %51 = vector.broadcast %cst_35 : f32 to vector<8x8xf32>
    %52 = arith.mulf %50, %51 : vector<8x8xf32>
    %c0_36 = arith.constant 0 : index
    %c0_37 = arith.constant 0 : index
    %c16_38 = arith.constant 16 : index
    %53 = vector.load %arg3[%c0_36, %c0_37, %c16_38] : memref<1x8x32xf32, #tpu.memory_space<vmem>>, vector<1x8x8xf32>
    %54 = vector.shape_cast %53 : vector<1x8x8xf32> to vector<8x8xf32>
    %c0_39 = arith.constant 0 : index
    %c0_40 = arith.constant 0 : index
    %c16_41 = arith.constant 16 : index
    %55 = vector.load %arg4[%c0_39, %c0_40, %c16_41] : memref<1x8x32xf32, #tpu.memory_space<vmem>>, vector<1x8x8xf32>
    %56 = vector.shape_cast %55 : vector<1x8x8xf32> to vector<8x8xf32>
    %cst_42 = arith.constant dense<0.000000e+00> : vector<8x8xf32>
    %57 = tpu.matmul %52, %54, %cst_42 {dimension_numbers = #tpu.dot_dimension_numbers<[1], [1], [0], [0], [0, 0, 1, 0], [], []>} : vector<8x8xf32>, vector<8x8xf32>, vector<8x8xf32> -> vector<8x8xf32>
    %cst_43 = arith.constant dense<0xFF800000> : vector<8xf32>
    %58 = vector.multi_reduction <maximumf>, %57, %cst_43 [1] : vector<8x8xf32> to vector<8xf32>
    %59 = vector.shape_cast %58 : vector<8xf32> to vector<8x1xf32>
    %60 = vector.broadcast %59 : vector<8x1xf32> to vector<8x8xf32>
    %61 = arith.subf %57, %60 : vector<8x8xf32>
    %62 = math.exp %61 : vector<8x8xf32>
    %cst_44 = arith.constant dense<0.000000e+00> : vector<8xf32>
    %63 = vector.multi_reduction <add>, %62, %cst_44 [1] : vector<8x8xf32> to vector<8xf32>
    %64 = vector.shape_cast %63 : vector<8xf32> to vector<8x1xf32>
    %65 = tpu.reciprocal %64 {approx = true} : vector<8x1xf32> -> vector<8x1xf32>
    %66 = vector.broadcast %65 : vector<8x1xf32> to vector<8x8xf32>
    %67 = arith.mulf %62, %66 : vector<8x8xf32>
    %cst_45 = arith.constant dense<0.000000e+00> : vector<8x8xf32>
    %68 = tpu.matmul %67, %56, %cst_45 {dimension_numbers = #tpu.dot_dimension_numbers<[1], [0], [0], [1], [0, 0, 1, 1], [], []>} : vector<8x8xf32>, vector<8x8xf32>, vector<8x8xf32> -> vector<8x8xf32>
    %c2 = arith.constant 2 : index
    %c0_46 = arith.constant 0 : index
    %c0_47 = arith.constant 0 : index
    %69 = vector.load %arg5[%c2, %c0_46, %c0_47] : memref<4x8x32xf32, #tpu.memory_space<vmem>>, vector<1x8x32xf32>
    %70 = vector.shape_cast %69 : vector<1x8x32xf32> to vector<8x32xf32>
    %cst_48 = arith.constant dense<0.000000e+00> : vector<8x32xf32>
    %71 = tpu.matmul %68, %70, %cst_48 {dimension_numbers = #tpu.dot_dimension_numbers<[1], [0], [0], [1], [0, 0, 1, 1], [], []>} : vector<8x8xf32>, vector<8x32xf32>, vector<8x32xf32> -> vector<8x32xf32>
    %72 = arith.addf %48, %71 : vector<8x32xf32>
    %c0_49 = arith.constant 0 : index
    %c0_50 = arith.constant 0 : index
    %c24 = arith.constant 24 : index
    %73 = vector.load %arg2[%c0_49, %c0_50, %c24] : memref<1x8x32xf32, #tpu.memory_space<vmem>>, vector<1x8x8xf32>
    %74 = vector.shape_cast %73 : vector<1x8x8xf32> to vector<8x8xf32>
    %cst_51 = arith.constant 0.176776692 : f32
    %75 = vector.broadcast %cst_51 : f32 to vector<8x8xf32>
    %76 = arith.mulf %74, %75 : vector<8x8xf32>
    %c0_52 = arith.constant 0 : index
    %c0_53 = arith.constant 0 : index
    %c24_54 = arith.constant 24 : index
    %77 = vector.load %arg3[%c0_52, %c0_53, %c24_54] : memref<1x8x32xf32, #tpu.memory_space<vmem>>, vector<1x8x8xf32>
    %78 = vector.shape_cast %77 : vector<1x8x8xf32> to vector<8x8xf32>
    %c0_55 = arith.constant 0 : index
    %c0_56 = arith.constant 0 : index
    %c24_57 = arith.constant 24 : index
    %79 = vector.load %arg4[%c0_55, %c0_56, %c24_57] : memref<1x8x32xf32, #tpu.memory_space<vmem>>, vector<1x8x8xf32>
    %80 = vector.shape_cast %79 : vector<1x8x8xf32> to vector<8x8xf32>
    %cst_58 = arith.constant dense<0.000000e+00> : vector<8x8xf32>
    %81 = tpu.matmul %76, %78, %cst_58 {dimension_numbers = #tpu.dot_dimension_numbers<[1], [1], [0], [0], [0, 0, 1, 0], [], []>} : vector<8x8xf32>, vector<8x8xf32>, vector<8x8xf32> -> vector<8x8xf32>
    %cst_59 = arith.constant dense<0xFF800000> : vector<8xf32>
    %82 = vector.multi_reduction <maximumf>, %81, %cst_59 [1] : vector<8x8xf32> to vector<8xf32>
    %83 = vector.shape_cast %82 : vector<8xf32> to vector<8x1xf32>
    %84 = vector.broadcast %83 : vector<8x1xf32> to vector<8x8xf32>
    %85 = arith.subf %81, %84 : vector<8x8xf32>
    %86 = math.exp %85 : vector<8x8xf32>
    %cst_60 = arith.constant dense<0.000000e+00> : vector<8xf32>
    %87 = vector.multi_reduction <add>, %86, %cst_60 [1] : vector<8x8xf32> to vector<8xf32>
    %88 = vector.shape_cast %87 : vector<8xf32> to vector<8x1xf32>
    %89 = tpu.reciprocal %88 {approx = true} : vector<8x1xf32> -> vector<8x1xf32>
    %90 = vector.broadcast %89 : vector<8x1xf32> to vector<8x8xf32>
    %91 = arith.mulf %86, %90 : vector<8x8xf32>
    %cst_61 = arith.constant dense<0.000000e+00> : vector<8x8xf32>
    %92 = tpu.matmul %91, %80, %cst_61 {dimension_numbers = #tpu.dot_dimension_numbers<[1], [0], [0], [1], [0, 0, 1, 1], [], []>} : vector<8x8xf32>, vector<8x8xf32>, vector<8x8xf32> -> vector<8x8xf32>
    %c3 = arith.constant 3 : index
    %c0_62 = arith.constant 0 : index
    %c0_63 = arith.constant 0 : index
    %93 = vector.load %arg5[%c3, %c0_62, %c0_63] : memref<4x8x32xf32, #tpu.memory_space<vmem>>, vector<1x8x32xf32>
    %94 = vector.shape_cast %93 : vector<1x8x32xf32> to vector<8x32xf32>
    %cst_64 = arith.constant dense<0.000000e+00> : vector<8x32xf32>
    %95 = tpu.matmul %92, %94, %cst_64 {dimension_numbers = #tpu.dot_dimension_numbers<[1], [0], [0], [1], [0, 0, 1, 1], [], []>} : vector<8x8xf32>, vector<8x32xf32>, vector<8x32xf32> -> vector<8x32xf32>
    %96 = arith.addf %72, %95 : vector<8x32xf32>
    %c0_65 = arith.constant 0 : index
    %c0_66 = arith.constant 0 : index
    %97 = vector.load %arg6[%c0_65, %c0_66] : memref<1x32xf32, #tpu.memory_space<vmem>>, vector<1x32xf32>
    %98 = vector.broadcast %97 : vector<1x32xf32> to vector<8x32xf32>
    %99 = arith.addf %96, %98 : vector<8x32xf32>
    %c0_67 = arith.constant 0 : index
    %c0_68 = arith.constant 0 : index
    %c0_69 = arith.constant 0 : index
    %100 = vector.load %arg7[%c0_67, %c0_68, %c0_69] : memref<1x8x32xf32, #tpu.memory_space<vmem>>, vector<1x8x32xf32>
    %101 = vector.shape_cast %100 : vector<1x8x32xf32> to vector<8x32xf32>
    %102 = vector.shape_cast %99 : vector<8x32xf32> to vector<1x8x32xf32>
    tpu.vector_store %arg7[%c0_67, %c0_68, %c0_69], %102 {strides = array<i32>} : memref<1x8x32xf32, #tpu.memory_space<vmem>>, vector<1x8x32xf32>,
    return
  }
  func.func @transform_0(%arg0: i32, %arg1: i32) -> (i32, i32, i32) {
    %c0_i32 = arith.constant 0 : i32
    %c0_i32_0 = arith.constant 0 : i32
    return %arg0, %arg1, %c0_i32 : i32, i32, i32
  }
  func.func @transform_1(%arg0: i32, %arg1: i32) -> (i32, i32, i32) {
    %c0_i32 = arith.constant 0 : i32
    %c0_i32_0 = arith.constant 0 : i32
    %c0_i32_1 = arith.constant 0 : i32
    return %arg0, %c0_i32, %c0_i32_0 : i32, i32, i32
  }
  func.func @transform_2(%arg0: i32, %arg1: i32) -> (i32, i32, i32) {
    %c0_i32 = arith.constant 0 : i32
    %c0_i32_0 = arith.constant 0 : i32
    %c0_i32_1 = arith.constant 0 : i32
    return %arg0, %c0_i32, %c0_i32_0 : i32, i32, i32
  }
  func.func @transform_3(%arg0: i32, %arg1: i32) -> (i32, i32, i32) {
    %c0_i32 = arith.constant 0 : i32
    %c0_i32_0 = arith.constant 0 : i32
    %c0_i32_1 = arith.constant 0 : i32
    %c0_i32_2 = arith.constant 0 : i32
    return %c0_i32, %c0_i32_0, %c0_i32_1 : i32, i32, i32
  }
  func.func @transform_4(%arg0: i32, %arg1: i32) -> (i32, i32) {
    %c0_i32 = arith.constant 0 : i32
    %c0_i32_0 = arith.constant 0 : i32
    %c0_i32_1 = arith.constant 0 : i32
    return %c0_i32, %c0_i32_0 : i32, i32
  }
  func.func @transform_5(%arg0: i32, %arg1: i32) -> (i32, i32, i32) {
    %c0_i32 = arith.constant 0 : i32
    %c0_i32_0 = arith.constant 0 : i32
    return %arg0, %arg1, %c0_i32 : i32, i32, i32
  }
}

</mosaic_0001>

<bundles_post_ra>
// kernel: tpu_custom_call.1
= control target key start
LH: loop header
LB: loop body
LE: loop exit
PB: predicated region body
PF: predicated region fallthrough
CT: control target
= control target key end

     0   :  { %s2243_s0 = inlined_call_operand.hbm [shape: f32[2,8,32], index: 0, kind: input, shape index: {}]   ;;  %s2244_s1 = inlined_call_operand.hbm [shape: f32[2,8,32], index: 1, kind: input, shape index: {}]   ;;  %s2245_s2 = inlined_call_operand.hbm [shape: f32[2,8,32], index: 2, kind: input, shape index: {}]   ;;  %s2246_s3 = inlined_call_operand.hbm [shape: f32[4,8,32], index: 3, kind: input, shape index: {}]   ;;  %s2247_s4 = inlined_call_operand.vmem [shape: f32[1,32], index: 4, kind: input, shape index: {}]   ;;  %s2248_s5 = inlined_call_operand.hbm [shape: f32[2,8,32], index: 5, kind: output, shape index: {}]  }
   0x1   :  { %2256 = sst [smem:[#allocation19_spill]] %s2244_s1 }
   0x2   :  { %10 = vsyncpa [#allocation3], 0 }
   0x3   :  { %12 = vsyncpa [#allocation3 + $0x1], 0 }
   0x4   :  { %13 = vsyncpa [#allocation6], 0 }
   0x5   :  { %15 = vsyncpa [#allocation6 + $0x1], 0 }
   0x6   :  { %16 = vsyncpa [#allocation9], 0 }
   0x7   :  { %17 = vsyncpa [#allocation4], 0 }
   0x8   :  { %19 = vsyncpa [#allocation4 + $0x1], 0  ;;  %s1933_s18 = smov 0   ;;  %s1935_s19 = smov 0  }
   0x9   :  { %s1937_s20 = smov 0   ;;  %s1939_s21 = smov 0  }
   0xa   :  { %s1941_s22 = smov 0   ;;  %s1943_s23 = smov 0  }
   0xb LB: > { %2257 = sst [smem:[#allocation15_spill]] %s1885_s22  ;;  %s37_s24 = sadd.s32 1, %s1885_s22  ;;  %s1889_s23 = sphi %s1943_s23, %s25_s23   ;;  %s1885_s22 = sphi %s1941_s22, %s2278_s22   ;;  %s1881_s21 = sphi %s1939_s21, %s2277_s21   ;;  %s1877_s20 = sphi %s1937_s20, %s2281_s20   ;;  %s1873_s19 = sphi %s1935_s19, %s2280_s19   ;;  %s1869_s18 = sphi %s1933_s18, %s2279_s18  }
   0xc   : > { %2258 = sst [smem:[#allocation16_spill]] %s1889_s23  ;;  %s46_s25 = sadd.s32 1, %s1877_s20 }
   0xd   : > { %p39_p0 = scmp.ge.s32.totalorder %s37_s24, 2  ;;  %p53_p1 = scmp.ne.s32.totalorder %s1877_s20, %s1873_s19 }
   0xe   : > { %p54_p2 = scmp.eq.s32.totalorder %s1889_s23, 0  ;;  %p1616_p5 = scmp.lt.s32.totalorder %s1889_s23, 2 }
   0xf   : > { %s2283_s24 = smov (%p39_p0, %s37_s24), 0  ;;  %s2249_s27 = sand.u32 1, %s1877_s20  }
  0x10   : > { %2259 = sst [smem:[#allocation17_spill]] %s2283_s24  ;;  %p55_p4 = por %p54_p2, %p53_p1 }
  0x11   : > { %s41_s26 = ssub.s32 %s1885_s22, %s2283_s24  ;;  %s1980_s28 = sshll.u32 %s2249_s27, 3 }
  0x12   : > { %p44_p6 = scmp.eq.s32.totalorder %s41_s26, 0  ;;  %s1983_s29 = sshll.u32 %s1885_s22, 7 }
  0x13   : > { %p1985_p7 = pnand %p1616_p5, %p55_p4  ;;  %s240_s7 = sand.u32 1, %s1889_s23  }
  0x14   : > { %s1990_s6 = scalar_select %p44_p6, %s1877_s20, %s46_s25  }
  0x15   : > { %s2262_s1 = sld [smem:[#allocation19_spill]]  ;;  %s244_s11 = scalar_lea.vmem [#allocation5], %s1980_s28 }
  0x16   : > { %2261 = sst [smem:[#allocation18_spill]] %s1990_s6  ;;  %s251_s12 = sshll.u32 %s244_s11, 4  ;;  %s252_s12 = int_to_ptr.vmem [resolvable:$true] %s251_s12 }
  0x17   : > { %s1998_s13 = scalar_lea.sflag [#allocation6], %s240_s7  ;;  %p2251_p8 = pneg %p1985_p7 }
  0x18   : > { %s1704_s14 = scalar_lea.vmem %s252_s12, 128  ;;  %s1891_s15 = smov [#allocation5]  }
  0x19   : > { %p1705_p9 = scmp.ne.s32.totalorder %s252_s12, %s1704_s14  ;;  %s1709_s16 = sshll.u32 %s1891_s15, 4  ;;  %s1710_s16 = int_to_ptr.vmem [resolvable:$false] %s1709_s16 }
  0x1a   : > { %s1711_s17 = scalar_lea.vmem %s1710_s16, 256  ;;  %p1712_p12 = scmp.lt.s32.totalorder %s252_s12, %s1710_s16 }
  0x1b   : > { %s249_s10 = scalar_lea.hbm %s2262_s1, %s1983_s29  ;;  %p1707_p10 = pnand %p1705_p9, %p2251_p8 }
  0x1c   : > { %p1713_p13 = scmp.lt.s32.totalorder %s1711_s17, %s1704_s14 }
  0x1d   : > { %p1708_p11 = pneg %p1707_p10 }
  0x1e   : > { %p1714_p0 = por %p1713_p13, %p1712_p12 }
  0x20   : > { %p1715_p2 = pnand %p1714_p0, %p1708_p11 }
  0x22   : > { %1718 = shalt.err (!%p1715_p2)
}
  0x23   : > { %1607 = dma.hbm_to_vmem [thread:$0]  (!%p1985_p7), %s249_s10, 128, %s252_s12, %s1998_s13  }
  0x24   : > { %s2009_s25 = sadd.s32 4294967295, %s1889_s23   ;;  %s1464_s26 = sadd.s32 4294967294, %s1889_s23  }
  0x25   : > { %p59_p4 = scmp.ne.s32.totalorder %s1873_s19, %s1869_s18  ;;  %p2250_p5 = scmp.eq.s32.totalorder %s2009_s25, 0 }
  0x26   : > { %p179_p6 = scmp.eq.s32.totalorder %s2009_s25, 1  ;;  %p185_p9 = scmp.eq.s32.totalorder %s1464_s26, 1 }
  0x27   : > { %p1465_p10 = scmp.ge.s32.totalorder %s1889_s23, 1  ;;  %p2019_p11 = por %p2250_p5, %p59_p4 }
  0x28   : > { %p2026_p12 = por %p179_p6, %p53_p1  ;;  %p2030_p13 = por %p185_p9, %p59_p4 }
  0x29   : > { %p192_p0 = scmp.lt.s32.totalorder %s1889_s23, 3  ;;  %s1892_s11 = smov [#allocation8]  }
  0x2a   : > { %s204_s12 = sshll.u32 %s1892_s11, 4  ;;  %s225_s26 = scalar_lea.vmem [#allocation2], %s1980_s28  ;;  %s205_s12 = int_to_ptr.vmem [resolvable:$true] %s204_s12 }
  0x2b   : > { %p2035_p2 = pnand %p1465_p10, %p192_p0  ;;  %s233_s27 = sshll.u32 %s225_s26, 4  ;;  %s2052_s27 = int_to_ptr.vmem [resolvable:$true] %s233_s27 }
  0x2c   : > { %s1730_s11 = scalar_lea.vmem %s205_s12, 512  ;;  %p1738_p0 = scmp.lt.s32.totalorder %s205_s12, %s205_s12 }
  0x2d   : > { %p1597_p3 = pneg %p2035_p2  ;;  %p1731_p6 = scmp.ne.s32.totalorder %s205_s12, %s1730_s11 }
  0x2f   : > { %p2043_p1 = pnand %p1597_p3, %p2250_p5  ;;  %p1739_p3 = scmp.lt.s32.totalorder %s1730_s11, %s1730_s11 }
  0x31   : > { %p1721_p4 = pneg %p2043_p1  ;;  %p1740_p5 = por %p1739_p3, %p1738_p0 }
  0x33   : > { %p1733_p9 = pnand %p1731_p6, %p1721_p4 }
  0x35   : > { %p1734_p10 = pneg %p1733_p9 }
  0x37   : > { %p1741_p8 = pnand %p1740_p5, %p1734_p10 }
  0x39   : > { %1744 = shalt.err (!%p1741_p8)
}
  0x3a   : > { %s1893_s1 = smov 128   ;;  %s1894_s15 = smov 8  }
  0x3b   : > { %1600 = dma.hbm_to_vmem [thread:$0]  (!%p2043_p1), %s2246_s3, 512, %s205_s12, [#allocation9], %s1893_s1, %s1893_s1, %s1894_s15  }
  0x3c   : > { %s2268_s17 = sand.u32 1, %s1877_s20   ;;  %s1758_s22 = scalar_lea.vmem %s2052_s27, 128 }
  0x3d   : > { %s222_s24 = scalar_lea.sflag [#allocation3], %s2268_s17  ;;  %p1759_p4 = scmp.ne.s32.totalorder %s2052_s27, %s1758_s22 }
  0x3e   : > { %p2269_p5 = pneg %p1985_p7  ;;  %s1895_s11 = smov [#allocation2]  }
  0x3f   : > { %s1763_s6 = sshll.u32 %s1895_s11, 4  ;;  %s1764_s6 = int_to_ptr.vmem [resolvable:$false] %s1763_s6 }
  0x40   : > { %p1761_p8 = pnand %p1759_p4, %p2269_p5  ;;  %s1765_s23 = scalar_lea.vmem %s1764_s6, 256 }
  0x41   : > { %p1766_p9 = scmp.lt.s32.totalorder %s2052_s27, %s1764_s6  ;;  %p1767_p10 = scmp.lt.s32.totalorder %s1765_s23, %s1758_s22 }
  0x42   : > { %p1762_p6 = pneg %p1761_p8 }
  0x43   : > { %p1768_p0 = por %p1767_p10, %p1766_p9 }
  0x45   : > { %p1769_p3 = pnand %p1768_p0, %p1762_p6 }
  0x47   : > { %1772 = shalt.err (!%p1769_p3)
}
  0x48   : > { %s2270_s14 = scalar_lea.hbm %s2243_s0, %s1983_s29  ;;  %s267_s6 = scalar_lea.hbm %s2245_s2, %s1983_s29 }
  0x49   : > { %1604 = dma.hbm_to_vmem [thread:$0]  (!%p1985_p7), %s2270_s14, 128, %s2052_s27, %s222_s24  }
  0x4a   : > { %s262_s22 = scalar_lea.vmem [#allocation7], %s1980_s28  ;;  %p2271_p4 = pmov %p2269_p5 }
  0x4b   : > { %s269_s23 = sshll.u32 %s262_s22, 4  ;;  %s1896_s26 = smov [#allocation7]   ;;  %s270_s23 = int_to_ptr.vmem [resolvable:$true] %s269_s23 }
  0x4c   : > { %s1786_s16 = scalar_lea.vmem %s270_s23, 128  ;;  %s1791_s11 = sshll.u32 %s1896_s26, 4  ;;  %s1792_s11 = int_to_ptr.vmem [resolvable:$false] %s1791_s11 }
  0x4d   : > { %p1787_p1 = scmp.ne.s32.totalorder %s270_s23, %s1786_s16  ;;  %s1793_s1 = scalar_lea.vmem %s1792_s11, 256 }
  0x4e   : > { %p1794_p6 = scmp.lt.s32.totalorder %s270_s23, %s1792_s11  ;;  %p1795_p9 = scmp.lt.s32.totalorder %s1793_s1, %s1786_s16 }
  0x4f   : > { %p1789_p5 = pnand %p1787_p1, %p2271_p4 }
  0x50   : > { %p1796_p10 = por %p1795_p9, %p1794_p6 }
  0x51   : > { %p1790_p8 = pneg %p1789_p5 }
  0x53   : > { %p1797_p0 = pnand %p1796_p10, %p1790_p8 }
  0x55   : > { %1800 = shalt.err (!%p1797_p0)
}
  0x56   : > { %1610 = dma.hbm_to_vmem [thread:$0]  (!%p1985_p7), %s267_s6, 128, %s270_s23, %s1998_s13  }
  0x57   : > { %278 = sbr.rel (%p2035_p2) target bundleno = 2733 (0xaad), region = 40  ;;  %s2091_s24 = sand.u32 (!%p2035_p2), 1, %s1873_s19  }
  0x58   : > { %s2094_s27 = sshll.u32 (!%p2035_p2), %s2091_s24, 3  ;;  %s281_s28 = scalar_lea.sflag (!%p2035_p2), [#allocation3], %s2091_s24 }
  0x59   : > { %s284_s29 = scalar_lea.vmem (!%p2035_p2), [#allocation2], %s2094_s27 }
  0x5c   : > { %1852 = dma.done.wait (%p2019_p11), %s281_s28, 128  }
  0x5d   : > { %1854 = vsyncadd (%p2019_p11), %s281_s28, 4294967168  ;;  %s289_s30 = sand.u32 1, %s2009_s25   ;;  %s293_s10 = scalar_lea.vmem [#allocation5], %s2094_s27 }
  0x5e   : > { %s290_s13 = scalar_lea.sflag [#allocation6], %s289_s30 }
  0x5f   : > { %1856 = dma.done.wait (%p2019_p11), %s290_s13, 256  }
  0x60   : > { %1858 = vsyncadd (%p2019_p11), %s290_s13, 4294967040  ;;  %s302_s12 = scalar_lea.vmem [#allocation7], %s2094_s27  ;;  %p2272_p7 = scmp.eq.s32.totalorder %s2009_s25, 0 }
  0x62   : > { %1860 = dma.done.wait (%p2272_p7), [#allocation9], 512   ;;  %p2273_p2 = pmov %p2272_p7 }
  0x63   : > { %v1897_v0 = vmov 0.0   ;;  %vm1898_vm0 = vmmov 0   ;;  %vm347_vm1 = vcmask 64512   ;;  %v2119_v1 = vld [vmem:[%s293_s10] sm:$0xff]  ;;  %v343_v2 = vld [vmem:[%s284_s29] sm:$0xff]  ;;  %s1899_s25 = smov 120  }
  0x64   : > { %1862 = vsyncadd (%p2273_p2), [#allocation9], 4294966784  ;;  %1525 = vmatprep.subr.mxu0 %v1897_v0  ;;  %1527 = vmatprep.mubr.msk.f32.mxu0 %vm1898_vm0, %v1897_v0  ;;  %v2123_v3 = vmul.f32 0.17677669, %v343_v2  ;;  %v2138_v12 = vld [vmem:[%s302_s12] sm:$0xff]  ;;  %v676_v29 = vld [vmem:[#allocation8 + $0x8] sm:$0xff] }
  0x65   : > { %1530 = vmatprep.subr.mxu1 %v1897_v0  ;;  %1532 = vmatprep.mubr.msk.f32.mxu1 %vm1898_vm0, %v1897_v0  ;;  %s1900_s7 = smov 112   ;;  %v508_v33 = vld [vmem:[#allocation8] sm:$0xff]  ;;  %s1901_s14 = smov 104   ;;  %v989_v56 = vld [vmem:[#allocation8 + $0x10] sm:$0xff]  ;;  %vm1313_vm2 = vcmask 261120  }
  0x66   : > { %1526 = vmatpush3.xpose.msk.msra.mxu0 %vm347_vm1, %v2119_v1  ;;  %511 = vrot.lane.b32.xlu1 %v2119_v1, %s1899_s25  ;;  %s1498_s6 = sshll.u32 %s1881_s21, 7  ;;  %s342_s22 = scalar_lea.vmem [#allocation10], %s2094_s27 }
  0x67   : > { %1540 = vmatprep.subr.mxu0 %v1897_v0  ;;  %1531 = vmatpush3.msra.mxu1 %v2138_v12  ;;  %s1330_s23 = sshll.u32 %s342_s22, 4  ;;  %s1328_s11 = scalar_lea.hbm %s2248_s5, %s1498_s6  ;;  %s1331_s23 = int_to_ptr.vmem [resolvable:$true] %s1330_s23 }
  0x68   : > { %1535 = vmatprep.subr.mxu1 %v1897_v0  ;;  %s1316_s1 = scalar_lea.sflag [#allocation4], %s2091_s24  ;;  %s1801_s28 = scalar_lea.vmem %s1331_s23, 128 }
  0x69   : > { %1528 = vmatmul.mubr.msk.f32.vlgmr.msra.gmra.mxu0 %vm347_vm1, %v2123_v3  ;;  %p1802_p11 = scmp.ne.s32.totalorder %s1331_s23, %s1801_s28  ;;  %s1902_s29 = smov [#allocation10]  }
  0x6a   : > { %1542 = vmatprep.mubr.msk.f32.mxu0 %vm1898_vm0, %v1897_v0  ;;  %509 = vrot.lane.b32.xlu1 %v2123_v3, %s1899_s25  ;;  %s1805_s21 = sshll.u32 %s1902_s29, 4  ;;  %s1806_s21 = int_to_ptr.vmem [resolvable:$false] %s1805_s21 }
  0x6b   : > { %p1803_p3 = pnand %p1802_p11, %p2026_p12  ;;  %s1807_s27 = scalar_lea.vmem %s1806_s21, 256 }
  0x6c   : > { %p1808_p4 = scmp.lt.s32.totalorder %s1331_s23, %s1806_s21  ;;  %p1809_p5 = scmp.lt.s32.totalorder %s1807_s27, %s1801_s28 }
  0x6d   : > { %p1804_p1 = pneg %p1803_p3 }
  0x6e   : > { %p1810_p8 = por %p1809_p5, %p1808_p4 }
  0x70   : > { %p1811_p6 = pnand %p1810_p8, %p1804_p1 }
  0xd8   : > { %v512_v14 = vpop.permute.xlu1 %511 }
  0xdc   : > { %v510_v17 = vpop.permute.xlu1 %509 }
 0x129   : > { %v420_v4 = vpop.f32.mrf.mxu0 }
 0x12a   : > { %v424_v5 = vsel %vm347_vm1, %v420_v4, -inf }
 0x12b   : > { %425 = vmax.xlane.f32.xlu0 %v424_v5  ;;  %v1529_v6 = vpop.f32.mrf.mxu0  ;;  %v1230_v5 = vld [vmem:[#allocation8 + $0x18] sm:$0xff] }
 0x1b4   : > { %v426_v7 = vpop.xlane.xlu0 %425 }
 0x1b5   : > { %v427_v8 = vsub.f32 %v420_v4, %v426_v7 }
 0x1b7   : > { %v428_v9 = vmul.f32 1.442695, %v427_v8 }
 0x1b9   : > { %1675 = vpow2.f32 %v428_v9 }
 0x1c6   : > { %v1676_v10 = vpop.eup %1675 }
 0x1c7   : > { %v430_v11 = vsel %vm347_vm1, %v1676_v10, 0.0 }
 0x1c8   : > { %431 = vadd.xlane.f32.xlu0 %v430_v11 }
 0x251   : > { %v432_v13 = vpop.xlane.xlu0 %431 }
 0x252   : > { %1677 = vrcp.f32 %v432_v13 }
 0x25f   : > { %v1678_v15 = vpop.eup %1677 }
 0x260   : > { %v434_v16 = vmul.f32 %v1678_v15, %v1676_v10  ;;  %v1496_v15 = vld [vmem:[%s2247_s4] ss:$0 sm:$0xff] }
 0x262   : > { %1533 = vmatmul.mubr.msk.f32.vlgmr.msra.gmra.mxu1 %vm347_vm1, %v434_v16 }
 0x263   : > { %1536 = vmatpush3.xpose.msk.msra.mxu1 %vm347_vm1, %v512_v14  ;;  %1537 = vmatprep.mubr.msk.f32.mxu1 %vm1898_vm0, %v1897_v0 }
 0x264   : > { %1545 = vmatprep.subr.mxu1 %v1897_v0 }
 0x266   : > { %1538 = vmatmul.mubr.msk.f32.vlgmr.msra.gmra.mxu1 %vm347_vm1, %v510_v17 }
 0x267   : > { %1547 = vmatprep.mubr.msk.f32.mxu1 %vm1898_vm0, %v1897_v0  ;;  %1546 = vmatpush3.msra.mxu1 %v676_v29 }
 0x268   : > { %1555 = vmatprep.subr.mxu1 %v1897_v0 }
 0x322   : > { %v504_v18 = vpop.f32.mrf.mxu1 }
 0x324   : > { %v1534_v19 = vpop.f32.mrf.mxu1 }
 0x326   : > { %v583_v20 = vpop.f32.mrf.mxu1 }
 0x327   : > { %v587_v21 = vsel %vm347_vm1, %v583_v20, -inf }
 0x328   : > { %588 = vmax.xlane.f32.xlu0 %v587_v21  ;;  %v1539_v22 = vpop.f32.mrf.mxu1 }
 0x33e   : > { %599 = vrot.lane.b32.xlu0 %v2138_v12, %s1899_s25 }
 0x342   : > { %825 = vrot.lane.b32.xlu0 %v2119_v1, %s1900_s7 }
 0x346   : > { %823 = vrot.lane.b32.xlu0 %v2123_v3, %s1900_s7 }
 0x3b1   : > { %v589_v23 = vpop.xlane.xlu0 %588 }
 0x3b2   : > { %v590_v24 = vsub.f32 %v583_v20, %v589_v23 }
 0x3b4   : > { %v591_v25 = vmul.f32 1.442695, %v590_v24 }
 0x3b5   : > { %v600_v28 = vpop.permute.xlu0 %599 }
 0x3b6   : > { %1679 = vpow2.f32 %v591_v25  ;;  %1541 = vmatpush3.msra.mxu0 %v600_v28 }
 0x3b7   : > { %1550 = vmatprep.subr.mxu0 %v1897_v0 }
 0x3b9   : > { %v826_v34 = vpop.permute.xlu0 %825 }
 0x3bd   : > { %v824_v37 = vpop.permute.xlu0 %823 }
 0x3c3   : > { %v1680_v26 = vpop.eup %1679 }
 0x3c4   : > { %v593_v27 = vsel %vm347_vm1, %v1680_v26, 0.0 }
 0x3c5   : > { %594 = vadd.xlane.f32.xlu1 %v593_v27 }
 0x3d6   : > { %912 = vrot.lane.b32.xlu1 %v2138_v12, %s1900_s7 }
 0x3da   : > { %1066 = vrot.lane.b32.xlu1 %v2119_v1, %s1901_s14 }
 0x44e   : > { %v595_v30 = vpop.xlane.xlu1 %594 }
 0x44f   : > { %1681 = vrcp.f32 %v595_v30 }
 0x452   : > { %v913_v45 = vpop.permute.xlu1 %912 }
 0x456   : > { %v1067_v51 = vpop.permute.xlu1 %1066 }
 0x45c   : > { %v1682_v31 = vpop.eup %1681 }
 0x45d   : > { %v597_v32 = vmul.f32 %v1682_v31, %v1680_v26 }
 0x45f   : > { %1543 = vmatmul.mubr.msk.f32.vlgmr.msra.gmra.mxu0 %vm347_vm1, %v597_v32 }
 0x460   : > { %1551 = vmatpush3.msra.mxu0 %v508_v33  ;;  %1552 = vmatprep.mubr.msk.f32.mxu0 %vm1898_vm0, %v1897_v0 }
 0x461   : > { %1560 = vmatprep.subr.mxu0 %v1897_v0 }
 0x463   : > { %1553 = vmatmul.mubr.msk.f32.vlgmr.msra.gmra.mxu0 %vm347_vm1, %v504_v18 }
 0x464   : > { %1562 = vmatprep.mubr.msk.f32.mxu0 %vm1898_vm0, %v1897_v0  ;;  %1561 = vmatpush3.msra.mxu0 %v913_v45 }
 0x465   : > { %1570 = vmatprep.subr.mxu0 %v1897_v0 }
 0x51f   : > { %v671_v35 = vpop.f32.mrf.mxu0 }
 0x520   : > { %1548 = vmatmul.mubr.msk.f32.vlgmr.msra.gmra.mxu1 %vm347_vm1, %v671_v35 }
 0x521   : > { %1556 = vmatpush3.xpose.msk.msra.mxu1 %vm347_vm1, %v826_v34  ;;  %v1544_v36 = vpop.f32.mrf.mxu0  ;;  %1557 = vmatprep.mubr.msk.f32.mxu1 %vm1898_vm0, %v1897_v0 }
 0x522   : > { %1565 = vmatprep.subr.mxu1 %v1897_v0 }
 0x523   : > { %v819_v38 = vpop.f32.mrf.mxu0 }
 0x524   : > { %1558 = vmatmul.mubr.msk.f32.vlgmr.msra.gmra.mxu1 %vm347_vm1, %v824_v37 }
 0x525   : > { %v1554_v39 = vpop.f32.mrf.mxu0  ;;  %1567 = vmatprep.mubr.msk.f32.mxu1 %vm1898_vm0, %v1897_v0  ;;  %1566 = vmatpush3.msra.mxu1 %v989_v56 }
 0x526   : > { %1575 = vmatprep.subr.mxu1 %v1897_v0 }
 0x5e0   : > { %v746_v40 = vpop.f32.mrf.mxu1 }
 0x5e2   : > { %v1549_v41 = vpop.f32.mrf.mxu1 }
 0x5e4   : > { %v897_v42 = vpop.f32.mrf.mxu1 }
 0x5e5   : > { %v901_v43 = vsel %vm347_vm1, %v897_v42, -inf }
 0x5e6   : > { %902 = vmax.xlane.f32.xlu0 %v901_v43  ;;  %v1559_v44 = vpop.f32.mrf.mxu1 }
 0x66f   : > { %v903_v46 = vpop.xlane.xlu0 %902 }
 0x670   : > { %v904_v47 = vsub.f32 %v897_v42, %v903_v46 }
 0x672   : > { %v905_v48 = vmul.f32 1.442695, %v904_v47 }
 0x674   : > { %1683 = vpow2.f32 %v905_v48 }
 0x681   : > { %v1684_v49 = vpop.eup %1683 }
 0x682   : > { %v907_v50 = vsel %vm347_vm1, %v1684_v49, 0.0 }
 0x683   : > { %908 = vadd.xlane.f32.xlu1 %v907_v50 }
 0x694   : > { %1064 = vrot.lane.b32.xlu1 %v2123_v3, %s1901_s14 }
 0x70c   : > { %v909_v52 = vpop.xlane.xlu1 %908 }
 0x70d   : > { %1685 = vrcp.f32 %v909_v52 }
 0x710   : > { %v1065_v55 = vpop.permute.xlu1 %1064 }
 0x71a   : > { %v1686_v53 = vpop.eup %1685 }
 0x71b   : > { %v911_v54 = vmul.f32 %v1686_v53, %v1684_v49 }
 0x71d   : > { %1563 = vmatmul.mubr.msk.f32.vlgmr.msra.gmra.mxu0 %vm347_vm1, %v911_v54 }
 0x71e   : > { %1571 = vmatpush3.xpose.msk.msra.mxu0 %vm347_vm1, %v1067_v51  ;;  %1572 = vmatprep.mubr.msk.f32.mxu0 %vm1898_vm0, %v1897_v0 }
 0x71f   : > { %1580 = vmatprep.subr.mxu0 %v1897_v0 }
 0x721   : > { %1573 = vmatmul.mubr.msk.f32.vlgmr.msra.gmra.mxu0 %vm347_vm1, %v1065_v55 }
 0x722   : > { %1582 = vmatprep.mubr.msk.f32.mxu0 %vm1898_vm0, %v1897_v0  ;;  %1581 = vmatpush3.msra.mxu0 %v1230_v5 }
 0x7dd   : > { %v984_v57 = vpop.f32.mrf.mxu0 }
 0x7de   : > { %1568 = vmatmul.mubr.msk.f32.vlgmr.msra.gmra.mxu1 %vm347_vm1, %v984_v57 }
 0x7df   : > { %v1564_v58 = vpop.f32.mrf.mxu0  ;;  %1577 = vmatprep.mubr.msk.f32.mxu1 %vm1898_vm0, %v1897_v0  ;;  %v820_v0 = vadd.f32 %v819_v38, %v746_v40 }
 0x7e1   : > { %v1138_v59 = vpop.f32.mrf.mxu0 }
 0x7e2   : > { %v1142_v60 = vsel %vm347_vm1, %v1138_v59, -inf }
 0x7e3   : > { %1143 = vmax.xlane.f32.xlu0 %v1142_v60  ;;  %v1574_v61 = vpop.f32.mrf.mxu0 }
 0x7f9   : > { %1153 = vrot.lane.b32.xlu0 %v2138_v12, %s1901_s14 }
 0x86c   : > { %v1144_v62 = vpop.xlane.xlu0 %1143 }
 0x86d   : > { %v1145_v63 = vsub.f32 %v1138_v59, %v1144_v62 }
 0x86f   : > { %v1146_v1 = vmul.f32 1.442695, %v1145_v63 }
 0x870   : > { %v1154_v4 = vpop.permute.xlu0 %1153 }
 0x871   : > { %1687 = vpow2.f32 %v1146_v1  ;;  %1576 = vmatpush3.msra.mxu1 %v1154_v4 }
 0x87e   : > { %v1688_v2 = vpop.eup %1687 }
 0x87f   : > { %v1148_v3 = vsel %vm347_vm1, %v1688_v2, 0.0 }
 0x880   : > { %1149 = vadd.xlane.f32.xlu1 %v1148_v3 }
 0x89e   : > { %v1059_v6 = vpop.f32.mrf.mxu1 }
 0x89f   : > { %v1063_v7 = vadd.f32 %v1059_v6, %v820_v0 }
 0x8a0   : > { %v1569_v8 = vpop.f32.mrf.mxu1 }
 0x909   : > { %v1150_v9 = vpop.xlane.xlu1 %1149 }
 0x90a   : > { %1689 = vrcp.f32 %v1150_v9 }
 0x917   : > { %v1690_v10 = vpop.eup %1689 }
 0x918   : > { %v1152_v11 = vmul.f32 %v1690_v10, %v1688_v2 }
 0x91a   : > { %1578 = vmatmul.mubr.msk.f32.vlgmr.msra.gmra.mxu1 %vm347_vm1, %v1152_v11 }
 0x9da   : > { %v1225_v12 = vpop.f32.mrf.mxu1 }
 0x9db   : > { %1583 = vmatmul.mubr.msk.f32.vlgmr.msra.gmra.mxu0 %vm347_vm1, %v1225_v12 }
 0x9dc   : > { %v1579_v13 = vpop.f32.mrf.mxu1 }
 0xa9b   : > { %v1300_v14 = vpop.f32.mrf.mxu0 }
 0xa9c   : > { %v1304_v16 = vadd.f32 %v1300_v14, %v1063_v7 }
 0xa9d   : > { %v1584_v17 = vpop.f32.mrf.mxu0 }
 0xa9e   : > { %v1312_v18 = vadd.f32 %v1496_v15, %v1304_v16 }
 0xaa0   : > { %1314 = vst.msk [vmem:[%s342_s22] sm:$0xff] %vm1313_vm2, %v1312_v18 }
 0xaa1   : > { %1814 = shalt.err (!%p1811_p6)
}
 0xaa2   : > { %s1815_s30 = scalar_lea.hbm %s1328_s11, 128  ;;  %s1819_s10 = scalar_lea.hbm %s2248_s5, 256 }
 0xaa3   : > { %p1816_p9 = scmp.ne.s32.totalorder %s1328_s11, %s1815_s30  ;;  %p1820_p7 = scmp.lt.s32.totalorder %s1328_s11, %s2248_s5 }
 0xaa4   : > { %p1821_p2 = scmp.lt.s32.totalorder %s1819_s10, %s1815_s30 }
 0xaa5   : > { %p1817_p10 = pnand %p1816_p9, %p2026_p12 }
 0xaa6   : > { %p1822_p11 = por %p1821_p2, %p1820_p7 }
 0xaa7   : > { %p1818_p0 = pneg %p1817_p10 }
 0xaa9   : > { %p1823_p3 = pnand %p1822_p11, %p1818_p0 }
 0xaab   : > { %1826 = shalt.err (!%p1823_p3)
}
 0xaac   : > { %1595 = dma.vmem_to_hbm [thread:$0]  (%p2026_p12), %s1331_s23, 128, %s1328_s11, %s1316_s1  }
 0xaad PF: > { %s2274_s7 = sld [smem:[#allocation16_spill]]  ;;  %s1342_s14 = sand.u32 1, %s1869_s18  }
 0xaae   : > { %s1343_s17 = scalar_lea.sflag [#allocation4], %s1342_s14 }
 0xab3   : > { %p2275_p1 = scmp.ge.s32.totalorder %s2274_s7, 2 }
 0xab5   : > { %p1612_p4 = pnand %p2275_p1, %p2030_p13 }
 0xab7   : > { %p1613_p5 = pneg %p1612_p4 }
 0xab9   : > { %1864 = dma.done.wait (%p1613_p5), %s1343_s17, 128  }
 0xaba   : > { %1866 = vsyncadd (%p1613_p5), %s1343_s17, 4294967168  ;;  %s25_s23 = sadd.s32 1, %s2274_s7   ;;  %s2276_s15 = sld [smem:[#allocation18_spill]] }
 0xabb   : > { %p22_p8 = scmp.ge.s32.totalorder %s25_s23, 4   ;;  %s2277_s21 = sld [smem:[#allocation15_spill]] }
 0xabc   : > { %s2278_s22 = sld [smem:[#allocation17_spill]]  ;;  %s2279_s18 = smov %s1873_s19 }
 0xabd   : > { %s2280_s19 = smov %s1877_s20  ;;  %24 = sbr.rel (!%p22_p8) target bundleno = 11 (0xb), region = 116 }
 0xac0   : > { %s2281_s20 = smov %s2276_s15 }
 0xac2   :  { %1348 = vsyncpa [#allocation3], 1 }
 0xac3   :  { %1350 = vsyncpa [#allocation3 + $0x1], 1 }
 0xac4   :  { %1351 = vsyncpa [#allocation6], 1 }
 0xac5   :  { %1353 = vsyncpa [#allocation6 + $0x1], 1 }
 0xac6   :  { %1354 = vsyncpa [#allocation9], 1 }
 0xac7   :  { %1355 = vsyncpa [#allocation4], 1 }
 0xac8   :  { %1357 = vsyncpa [#allocation4 + $0x1], 1 }

</bundles_post_ra>
